<compile_context>
chip_gen: v5e
topology: v5e:2x2
jax: 0.10.0
libtpu: 0.0.40
codegen_flags: <defaults>
</compile_context>

<pallas_src>
import numpy as np
import jax
import jax.numpy as jnp
from jax import lax
from jax.experimental import pallas as pl
from jax.experimental.pallas import tpu as pltpu

# -----------------------------------------------------------------------------
# Hyperparameters (mirror ParametricLSTMCNN.__init__ arguments)
# -----------------------------------------------------------------------------
NUM_LAYERS_CONV = 2
OUTPUT_CHANNELS = [4, 1]
KERNEL_SIZES = [3, 3]
STRIDE_SIZES = [1, 1]
PADDING_SIZES = [1, 1]
HIDDEN_SIZE_LSTM = 32
NUM_LAYERS_LSTM = 1          # single-layer LSTM (LSTM dropout inactive)
HIDDEN_NEURONS_DENSE = [16, 16, 8, 1]
SEQ = 8
INPUT_LSTM = 4
BATCH = 2
BN_EPS = 1e-5

HID = HIDDEN_SIZE_LSTM                      # 32
G4 = 4 * HID                                # 128 (fused gate width = 1 vreg)


def conv_output_shapes():
    shapes = []
    for i in range(NUM_LAYERS_CONV):
        l_in = HIDDEN_NEURONS_DENSE[0] if i == 0 else shapes[-1]
        shapes.append((l_in - KERNEL_SIZES[i] + 2 * PADDING_SIZES[i])
                      // STRIDE_SIZES[i] + 1)
    return shapes


_L_OUTS = conv_output_shapes()
L0 = HIDDEN_NEURONS_DENSE[0]                # conv1 input length (16)
L1, L2 = _L_OUTS                            # conv1/conv2 output lengths (16, 16)
D0 = HIDDEN_NEURONS_DENSE[0]                # dense1 out (16)
D2 = HIDDEN_NEURONS_DENSE[1]                # dense2 out (16)
D3 = HIDDEN_NEURONS_DENSE[2]                # dense3 out (8)
C1 = OUTPUT_CHANNELS[0]                     # conv1 out channels (4)
C2 = 1                                      # conv2 (last conv) out channels
K1, K2 = KERNEL_SIZES

# -------------------------- LSTM slab layout (128 lanes) ---------------------
OFF_WIH = 0                                 # rows [0, I)
OFF_WHH = 8                                 # rows [8, 8+H)
OFF_BIAS = 40                               # row 40
LSTM_ROWS = 48


def _align8(n):
    return (n + 7) // 8 * 8


def _build_misc_layout():
    """Row-packed layout of all small parameters in one 32-lane slab."""
    entries = [
        ('h0', (BATCH, HID)), ('c0', (BATCH, HID)),
        ('w1', (HID, D0)), ('b1', (1, D0)),
        ('cw1', (K1 * BATCH * C1, SEQ * BATCH)), ('cb1', (BATCH * C1, 1)),
        ('s1', (K1 * L0, L1)),
        ('cw2', (K2 * BATCH * C2, BATCH * C1)), ('cb2', (BATCH * C2, 1)),
        ('s2', (K2 * L1, L2)),
        ('w2', (L2, D2)), ('b2', (1, D2)),
        ('w3', (D2, D3)), ('b3', (1, D3)),
        ('w4', (D3, 1)), ('b4', (1, 1)),
    ]
    layout, off = {}, 0
    for name, shape in entries:
        off = _align8(off)                  # 8-aligned row offsets -> tile-aligned slices
        layout[name] = (off, shape)
        off += shape[0]
    width = max(s[1] for _, s in entries)
    return layout, _align8(off), width


MISC_LAYOUT, MISC_ROWS, MISC_WIDTH = _build_misc_layout()


def _full_spec(shape):
    """Whole-array block (no grid): block_shape == full array dims."""
    return pl.BlockSpec(shape, lambda: (0,) * len(shape))


# -----------------------------------------------------------------------------
# Fused kernel: whole forward pass in one pallas_call
# -----------------------------------------------------------------------------
def fused_kernel(x_ref, lstm_ref, misc_ref, out_ref, hbuf_ref):
    f32 = jnp.float32

    def m(name):
        off, (nr, nc) = MISC_LAYOUT[name]
        return misc_ref[off:off + nr, 0:nc]

    wih = lstm_ref[OFF_WIH:OFF_WIH + INPUT_LSTM, :]      # (I, 4H)
    whh = lstm_ref[OFF_WHH:OFF_WHH + HID, :]             # (H, 4H)  stationary RHS
    bias = lstm_ref[OFF_BIAS:OFF_BIAS + 1, :]            # (1, 4H)

    # ---------------- LSTM: hoisted input projection + fused-gate recurrence --
    # x rows are time-major (row = t*B + b).
    xg = jnp.dot(x_ref[...], wih, preferred_element_type=f32) + bias   # (T*B, 4H)

    h = m('h0')                                          # (B, H)
    c = m('c0')
    for t in range(SEQ):                                 # static unroll, T = 8
        r = t * BATCH
        gates = xg[r:r + BATCH, :] + jnp.dot(h, whh, preferred_element_type=f32)  # (B,128)
        sg = jax.nn.sigmoid(gates)                       # one EUP pass over 128 lanes
        tg = jnp.tanh(gates)                             # one EUP pass over 128 lanes
        i_g = sg[:, 0:HID]                               # PyTorch gate order i,f,g,o
        f_g = sg[:, HID:2 * HID]
        g_g = tg[:, 2 * HID:3 * HID]
        o_g = sg[:, 3 * HID:4 * HID]
        c = f_g * c + i_g * g_g
        h = o_g * jnp.tanh(c)
        hbuf_ref[r:r + BATCH, :] = h                     # one contiguous (B,H) store

    # ---------------- dense1: relu(dense1(relu(lstm_out))) --------------------
    lstm_flat = hbuf_ref[...]                            # (T*B, H), time-major
    d1 = jnp.maximum(
        jnp.dot(jnp.maximum(lstm_flat, 0.0), m('w1'),
                preferred_element_type=f32) + m('b1'), 0.0)          # (T*B, L0)

    # ---------------- conv1 + bn1 (batched over B, folded weights) ------------
    # cw1 rows are (tap k, batch b, out-channel c); batch de-interleave of the
    # time-major d1 is folded into the columns, so this is one plain matmul.
    y1 = jnp.dot(m('cw1'), d1, preferred_element_type=f32)           # (K1*B*C1, L0)
    s1 = m('s1')
    rows1 = BATCH * C1
    acc1 = jnp.zeros((rows1, L1), f32)
    for k in range(K1):
        acc1 = acc1 + jnp.dot(y1[k * rows1:(k + 1) * rows1, :],
                              s1[k * L0:(k + 1) * L0, :],
                              preferred_element_type=f32)
    c1 = acc1 + m('cb1')                                              # (B*C1, L1)

    # ---------------- conv2 + bn2 ---------------------------------------------
    y2 = jnp.dot(m('cw2'), c1, preferred_element_type=f32)            # (K2*B*C2, L1)
    s2 = m('s2')
    rows2 = BATCH * C2
    acc2 = jnp.zeros((rows2, L2), f32)
    for k in range(K2):
        acc2 = acc2 + jnp.dot(y2[k * rows2:(k + 1) * rows2, :],
                              s2[k * L1:(k + 1) * L1, :],
                              preferred_element_type=f32)
    c2 = acc2 + m('cb2')                                              # (B*C2, L2) = (2,16)

    # ---------------- dense2..dense4 (dropout is identity in eval) ------------
    d2 = jnp.maximum(jnp.dot(c2, m('w2'), preferred_element_type=f32) + m('b2'), 0.0)
    d3 = jnp.maximum(jnp.dot(d2, m('w3'), preferred_element_type=f32) + m('b3'), 0.0)
    out_ref[...] = jnp.dot(d3, m('w4'), preferred_element_type=f32) + m('b4')


def parametric_lstm_cnn_forward(x, prep):
    b, t, i = x.shape
    # Time-major flattened input so per-timestep rows are contiguous in-kernel.
    x2d = jnp.transpose(x, (1, 0, 2)).reshape(t * b, i)
    args = (x2d, prep['lstm_slab'], prep['misc_slab'])

    out2d = pl.pallas_call(
        fused_kernel,
        out_shape=jax.ShapeDtypeStruct((b * C2, 1), jnp.float32),
        in_specs=[_full_spec(a.shape) for a in args],
        out_specs=_full_spec((b * C2, 1)),
        scratch_shapes=[pltpu.VMEM((t * b, HID), jnp.float32)],  # LSTM hidden states
    )(*args)
    return out2d.reshape(b, C2, 1)


# -----------------------------------------------------------------------------
# One-time parameter preparation: fuse gates, fold BN/conv, pack into 2 slabs
# -----------------------------------------------------------------------------
def prepare_params(p):
    pn = {k: np.asarray(v, np.float32) for k, v in p.items()}

    # ---- LSTM slab (128 lanes): fused-gate weights, gate order i|f|g|o ------
    lstm_slab = np.zeros((LSTM_ROWS, G4), np.float32)
    lstm_slab[OFF_WIH:OFF_WIH + INPUT_LSTM, :] = pn['lstm_w_ih'].T       # (I, 4H)
    lstm_slab[OFF_WHH:OFF_WHH + HID, :] = pn['lstm_w_hh'].T              # (H, 4H)
    lstm_slab[OFF_BIAS, :] = pn['lstm_b_ih'] + pn['lstm_b_hh']

    # ---- misc slab (32 lanes): everything else -------------------------------
    misc = np.zeros((MISC_ROWS, MISC_WIDTH), np.float32)

    def put(name, arr):
        off, shape = MISC_LAYOUT[name]
        arr = np.asarray(arr, np.float32)
        assert arr.shape == shape, (name, arr.shape, shape)
        misc[off:off + shape[0], 0:shape[1]] = arr

    put('h0', pn['h0'])
    put('c0', pn['c0'])
    put('w1', pn['dense1_w'].T)
    put('b1', pn['dense1_b'][None, :])

    l_ins = [L0, L1]
    l_outs = [L1, L2]
    for i in range(NUM_LAYERS_CONV):
        w = pn[f'conv{i + 1}_w']                     # (C_out, C_in, K)
        c_out, c_in, k = w.shape
        scale = pn[f'bn{i + 1}_gamma'] / np.sqrt(pn[f'bn{i + 1}_var'] + BN_EPS)
        shift = pn[f'bn{i + 1}_beta'] - pn[f'bn{i + 1}_mean'] * scale
        wsc = w * scale[:, None, None]               # BN scale folded into taps
        if i == 0:
            # Consume time-major d1 directly: column index = t*B + b.
            cw = np.zeros((k * BATCH * c_out, SEQ * BATCH), np.float32)
            for kk in range(k):
                for b in range(BATCH):
                    for co in range(c_out):
                        row = kk * BATCH * c_out + b * c_out + co
                        cw[row, b::BATCH] = wsc[co, :, kk]
        else:
            # Consume row-stacked conv1 output: row index = b*C1 + channel.
            cw = np.zeros((k * BATCH * c_out, BATCH * c_in), np.float32)
            for kk in range(k):
                for b in range(BATCH):
                    for co in range(c_out):
                        row = kk * BATCH * c_out + b * c_out + co
                        cw[row, b * c_in:(b + 1) * c_in] = wsc[co, :, kk]
        cb = np.tile((pn[f'conv{i + 1}_b'] * scale + shift).reshape(c_out, 1),
                     (BATCH, 1))                     # folded bias, rows = b*C + c
        sel = np.zeros((k * l_ins[i], l_outs[i]), np.float32)
        for kk in range(k):
            for lo in range(l_outs[i]):
                li = lo * STRIDE_SIZES[i] + kk - PADDING_SIZES[i]
                if 0 <= li < l_ins[i]:
                    sel[kk * l_ins[i] + li, lo] = 1.0
        put(f'cw{i + 1}', cw)
        put(f'cb{i + 1}', cb)
        put(f's{i + 1}', sel)

    put('w2', pn['dense2_w'].T)
    put('b2', pn['dense2_b'][None, :])
    put('w3', pn['dense3_w'].T)
    put('b3', pn['dense3_b'][None, :])
    put('w4', pn['dense4_w'].T)
    put('b4', pn['dense4_b'][None, :])

    return {'lstm_slab': jnp.asarray(lstm_slab), 'misc_slab': jnp.asarray(misc)}


# -----------------------------------------------------------------------------
# Deterministic parameter initialization (shapes follow the module __init__)
# -----------------------------------------------------------------------------
def init_params(key):
    keys = iter(jax.random.split(key, 64))

    def rn(shape, scale=0.1):
        return scale * jax.random.normal(next(keys), shape, jnp.float32)

    p = {}
    p['lstm_w_ih'] = rn((4 * HID, INPUT_LSTM))
    p['lstm_w_hh'] = rn((4 * HID, HID))
    p['lstm_b_ih'] = rn((4 * HID,))
    p['lstm_b_hh'] = rn((4 * HID,))
    p['h0'] = rn((BATCH, HID), 1.0)
    p['c0'] = rn((BATCH, HID), 1.0)

    p['dense1_w'] = rn((HIDDEN_NEURONS_DENSE[0], HID))
    p['dense1_b'] = rn((HIDDEN_NEURONS_DENSE[0],))

    in_ch = SEQ
    for i in range(NUM_LAYERS_CONV):
        out_ch = 1 if i == NUM_LAYERS_CONV - 1 else OUTPUT_CHANNELS[i]
        p[f'conv{i + 1}_w'] = rn((out_ch, in_ch, KERNEL_SIZES[i]))
        p[f'conv{i + 1}_b'] = rn((out_ch,))
        p[f'bn{i + 1}_gamma'] = 1.0 + rn((out_ch,))
        p[f'bn{i + 1}_beta'] = rn((out_ch,))
        p[f'bn{i + 1}_mean'] = rn((out_ch,))
        p[f'bn{i + 1}_var'] = 1.0 + jnp.abs(rn((out_ch,)))
        in_ch = out_ch

    n_dense = len(HIDDEN_NEURONS_DENSE)
    in_f = _L_OUTS[-1]
    for j in range(2, n_dense + 1):
        out_f = 1 if j == n_dense else HIDDEN_NEURONS_DENSE[j - 1]
        p[f'dense{j}_w'] = rn((out_f, in_f))
        p[f'dense{j}_b'] = rn((out_f,))
        in_f = out_f
    return p


# -----------------------------------------------------------------------------
# Pure-JAX reference for correctness check (torch-layout params)
# -----------------------------------------------------------------------------
def reference_forward(x, params):
    wih = jnp.transpose(params['lstm_w_ih'])
    whh = jnp.transpose(params['lstm_w_hh'])
    bias = params['lstm_b_ih'] + params['lstm_b_hh']

    def step(carry, x_t):
        h, c = carry
        gates = x_t @ wih + h @ whh + bias
        i_g = jax.nn.sigmoid(gates[:, :HID])
        f_g = jax.nn.sigmoid(gates[:, HID:2 * HID])
        g_g = jnp.tanh(gates[:, 2 * HID:3 * HID])
        o_g = jax.nn.sigmoid(gates[:, 3 * HID:])
        c_new = f_g * c + i_g * g_g
        h_new = o_g * jnp.tanh(c_new)
        return (h_new, c_new), h_new

    _, hs = lax.scan(step, (params['h0'], params['c0']), jnp.transpose(x, (1, 0, 2)))
    out = jnp.transpose(hs, (1, 0, 2))
    out = jax.nn.relu(jax.nn.relu(out) @ jnp.transpose(params['dense1_w'])
                      + params['dense1_b'])
    for i in range(NUM_LAYERS_CONV):
        w = params[f'conv{i + 1}_w']
        out = lax.conv_general_dilated(
            out, w, window_strides=(STRIDE_SIZES[i],),
            padding=[(PADDING_SIZES[i], PADDING_SIZES[i])],
            dimension_numbers=('NCH', 'OIH', 'NCH'))
        out = out + params[f'conv{i + 1}_b'][None, :, None]
        scale = params[f'bn{i + 1}_gamma'] / jnp.sqrt(params[f'bn{i + 1}_var'] + BN_EPS)
        shift = params[f'bn{i + 1}_beta'] - params[f'bn{i + 1}_mean'] * scale
        out = out * scale[None, :, None] + shift[None, :, None]
    n_dense = len(HIDDEN_NEURONS_DENSE)
    for j in range(1, n_dense - 1):
        out = jax.nn.relu(out @ jnp.transpose(params[f'dense{j + 1}_w'])
                          + params[f'dense{j + 1}_b'])
    out = out @ jnp.transpose(params[f'dense{n_dense}_w']) + params[f'dense{n_dense}_b']
    return out


if __name__ == "__main__":
    key = jax.random.PRNGKey(0)
    pkey, xkey = jax.random.split(key)
    params = init_params(pkey)
    prep = prepare_params(params)              # one-time weight preprocessing / packing
    x = jax.random.normal(xkey, (BATCH, SEQ, INPUT_LSTM), jnp.float32)

    fwd = jax.jit(parametric_lstm_cnn_forward)
    out = jax.block_until_ready(fwd(x, prep))

    ref = reference_forward(x, params)
    assert out.shape == (BATCH, 1, 1), out.shape
    np.testing.assert_allclose(np.asarray(out), np.asarray(ref), rtol=1e-3, atol=1e-3)
    print("KERNEL_OK")
</pallas_src>

<mosaic_0001>
module attributes {stable_mosaic.version = 11 : i64} {
  func.func @fused_kernel(%arg0: memref<16x4xf32, #tpu.memory_space<vmem>>, %arg1: memref<48x128xf32, #tpu.memory_space<vmem>>, %arg2: memref<264x32xf32, #tpu.memory_space<vmem>>, %arg3: memref<2x1xf32, #tpu.memory_space<vmem>>, %arg4: memref<16x32xf32, #tpu.memory_space<vmem>>) attributes {dimension_semantics = [], scalar_prefetch = 0 : i64, scratch_operands = 1 : i64, tpu.core_type = #tpu.core_type<tc>} {
    %c0 = arith.constant 0 : index
    %c0_0 = arith.constant 0 : index
    %0 = vector.load %arg1[%c0, %c0_0] : memref<48x128xf32, #tpu.memory_space<vmem>>, vector<4x128xf32>
    %c8 = arith.constant 8 : index
    %c0_1 = arith.constant 0 : index
    %1 = vector.load %arg1[%c8, %c0_1] : memref<48x128xf32, #tpu.memory_space<vmem>>, vector<32x128xf32>
    %c40 = arith.constant 40 : index
    %c0_2 = arith.constant 0 : index
    %2 = vector.load %arg1[%c40, %c0_2] : memref<48x128xf32, #tpu.memory_space<vmem>>, vector<1x128xf32>
    %c0_3 = arith.constant 0 : index
    %c0_4 = arith.constant 0 : index
    %3 = vector.load %arg0[%c0_3, %c0_4] : memref<16x4xf32, #tpu.memory_space<vmem>>, vector<16x4xf32>
    %cst = arith.constant dense<0.000000e+00> : vector<16x128xf32>
    %4 = tpu.matmul %3, %0, %cst {dimension_numbers = #tpu.dot_dimension_numbers<[1], [0], [0], [1], [0, 0, 1, 1], [], []>} : vector<16x4xf32>, vector<4x128xf32>, vector<16x128xf32> -> vector<16x128xf32>
    %5 = vector.broadcast %2 : vector<1x128xf32> to vector<16x128xf32>
    %6 = arith.addf %4, %5 : vector<16x128xf32>
    %c0_5 = arith.constant 0 : index
    %c0_6 = arith.constant 0 : index
    %7 = vector.load %arg2[%c0_5, %c0_6] : memref<264x32xf32, #tpu.memory_space<vmem>>, vector<2x32xf32>
    %c8_7 = arith.constant 8 : index
    %c0_8 = arith.constant 0 : index
    %8 = vector.load %arg2[%c8_7, %c0_8] : memref<264x32xf32, #tpu.memory_space<vmem>>, vector<2x32xf32>
    %9 = vector.extract_strided_slice %6 {offsets = [0, 0], sizes = [2, 128], strides = [1, 1]} : vector<16x128xf32> to vector<2x128xf32>
    %cst_9 = arith.constant dense<0.000000e+00> : vector<2x128xf32>
    %10 = tpu.matmul %7, %1, %cst_9 {dimension_numbers = #tpu.dot_dimension_numbers<[1], [0], [0], [1], [0, 0, 1, 1], [], []>} : vector<2x32xf32>, vector<32x128xf32>, vector<2x128xf32> -> vector<2x128xf32>
    %11 = arith.addf %9, %10 : vector<2x128xf32>
    %12 = arith.negf %11 : vector<2x128xf32>
    %13 = math.exp %12 : vector<2x128xf32>
    %cst_10 = arith.constant 1.000000e+00 : f32
    %14 = vector.broadcast %cst_10 : f32 to vector<2x128xf32>
    %15 = arith.addf %14, %13 : vector<2x128xf32>
    %16 = arith.divf %14, %15 : vector<2x128xf32>
    %17 = math.tanh %11 : vector<2x128xf32>
    %18 = vector.extract_strided_slice %16 {offsets = [0, 0], sizes = [2, 32], strides = [1, 1]} : vector<2x128xf32> to vector<2x32xf32>
    %19 = vector.extract_strided_slice %16 {offsets = [0, 32], sizes = [2, 32], strides = [1, 1]} : vector<2x128xf32> to vector<2x32xf32>
    %20 = vector.extract_strided_slice %17 {offsets = [0, 64], sizes = [2, 32], strides = [1, 1]} : vector<2x128xf32> to vector<2x32xf32>
    %21 = vector.extract_strided_slice %16 {offsets = [0, 96], sizes = [2, 32], strides = [1, 1]} : vector<2x128xf32> to vector<2x32xf32>
    %22 = arith.mulf %19, %8 : vector<2x32xf32>
    %23 = arith.mulf %18, %20 : vector<2x32xf32>
    %24 = arith.addf %22, %23 : vector<2x32xf32>
    %25 = math.tanh %24 : vector<2x32xf32>
    %26 = arith.mulf %21, %25 : vector<2x32xf32>
    %c0_11 = arith.constant 0 : index
    %c0_12 = arith.constant 0 : index
    %27 = vector.load %arg4[%c0_11, %c0_12] : memref<16x32xf32, #tpu.memory_space<vmem>>, vector<2x32xf32>
    tpu.vector_store %arg4[%c0_11, %c0_12], %26 {strides = array<i32>} : memref<16x32xf32, #tpu.memory_space<vmem>>, vector<2x32xf32>,
    %28 = vector.extract_strided_slice %6 {offsets = [2, 0], sizes = [2, 128], strides = [1, 1]} : vector<16x128xf32> to vector<2x128xf32>
    %cst_13 = arith.constant dense<0.000000e+00> : vector<2x128xf32>
    %29 = tpu.matmul %26, %1, %cst_13 {dimension_numbers = #tpu.dot_dimension_numbers<[1], [0], [0], [1], [0, 0, 1, 1], [], []>} : vector<2x32xf32>, vector<32x128xf32>, vector<2x128xf32> -> vector<2x128xf32>
    %30 = arith.addf %28, %29 : vector<2x128xf32>
    %31 = arith.negf %30 : vector<2x128xf32>
    %32 = math.exp %31 : vector<2x128xf32>
    %cst_14 = arith.constant 1.000000e+00 : f32
    %33 = vector.broadcast %cst_14 : f32 to vector<2x128xf32>
    %34 = arith.addf %33, %32 : vector<2x128xf32>
    %35 = arith.divf %33, %34 : vector<2x128xf32>
    %36 = math.tanh %30 : vector<2x128xf32>
    %37 = vector.extract_strided_slice %35 {offsets = [0, 0], sizes = [2, 32], strides = [1, 1]} : vector<2x128xf32> to vector<2x32xf32>
    %38 = vector.extract_strided_slice %35 {offsets = [0, 32], sizes = [2, 32], strides = [1, 1]} : vector<2x128xf32> to vector<2x32xf32>
    %39 = vector.extract_strided_slice %36 {offsets = [0, 64], sizes = [2, 32], strides = [1, 1]} : vector<2x128xf32> to vector<2x32xf32>
    %40 = vector.extract_strided_slice %35 {offsets = [0, 96], sizes = [2, 32], strides = [1, 1]} : vector<2x128xf32> to vector<2x32xf32>
    %41 = arith.mulf %38, %24 : vector<2x32xf32>
    %42 = arith.mulf %37, %39 : vector<2x32xf32>
    %43 = arith.addf %41, %42 : vector<2x32xf32>
    %44 = math.tanh %43 : vector<2x32xf32>
    %45 = arith.mulf %40, %44 : vector<2x32xf32>
    %c2 = arith.constant 2 : index
    %c0_15 = arith.constant 0 : index
    %46 = vector.load %arg4[%c2, %c0_15] : memref<16x32xf32, #tpu.memory_space<vmem>>, vector<2x32xf32>
    tpu.vector_store %arg4[%c2, %c0_15], %45 {strides = array<i32>} : memref<16x32xf32, #tpu.memory_space<vmem>>, vector<2x32xf32>,
    %47 = vector.extract_strided_slice %6 {offsets = [4, 0], sizes = [2, 128], strides = [1, 1]} : vector<16x128xf32> to vector<2x128xf32>
    %cst_16 = arith.constant dense<0.000000e+00> : vector<2x128xf32>
    %48 = tpu.matmul %45, %1, %cst_16 {dimension_numbers = #tpu.dot_dimension_numbers<[1], [0], [0], [1], [0, 0, 1, 1], [], []>} : vector<2x32xf32>, vector<32x128xf32>, vector<2x128xf32> -> vector<2x128xf32>
    %49 = arith.addf %47, %48 : vector<2x128xf32>
    %50 = arith.negf %49 : vector<2x128xf32>
    %51 = math.exp %50 : vector<2x128xf32>
    %cst_17 = arith.constant 1.000000e+00 : f32
    %52 = vector.broadcast %cst_17 : f32 to vector<2x128xf32>
    %53 = arith.addf %52, %51 : vector<2x128xf32>
    %54 = arith.divf %52, %53 : vector<2x128xf32>
    %55 = math.tanh %49 : vector<2x128xf32>
    %56 = vector.extract_strided_slice %54 {offsets = [0, 0], sizes = [2, 32], strides = [1, 1]} : vector<2x128xf32> to vector<2x32xf32>
    %57 = vector.extract_strided_slice %54 {offsets = [0, 32], sizes = [2, 32], strides = [1, 1]} : vector<2x128xf32> to vector<2x32xf32>
    %58 = vector.extract_strided_slice %55 {offsets = [0, 64], sizes = [2, 32], strides = [1, 1]} : vector<2x128xf32> to vector<2x32xf32>
    %59 = vector.extract_strided_slice %54 {offsets = [0, 96], sizes = [2, 32], strides = [1, 1]} : vector<2x128xf32> to vector<2x32xf32>
    %60 = arith.mulf %57, %43 : vector<2x32xf32>
    %61 = arith.mulf %56, %58 : vector<2x32xf32>
    %62 = arith.addf %60, %61 : vector<2x32xf32>
    %63 = math.tanh %62 : vector<2x32xf32>
    %64 = arith.mulf %59, %63 : vector<2x32xf32>
    %c4 = arith.constant 4 : index
    %c0_18 = arith.constant 0 : index
    %65 = vector.load %arg4[%c4, %c0_18] : memref<16x32xf32, #tpu.memory_space<vmem>>, vector<2x32xf32>
    tpu.vector_store %arg4[%c4, %c0_18], %64 {strides = array<i32>} : memref<16x32xf32, #tpu.memory_space<vmem>>, vector<2x32xf32>,
    %66 = vector.extract_strided_slice %6 {offsets = [6, 0], sizes = [2, 128], strides = [1, 1]} : vector<16x128xf32> to vector<2x128xf32>
    %cst_19 = arith.constant dense<0.000000e+00> : vector<2x128xf32>
    %67 = tpu.matmul %64, %1, %cst_19 {dimension_numbers = #tpu.dot_dimension_numbers<[1], [0], [0], [1], [0, 0, 1, 1], [], []>} : vector<2x32xf32>, vector<32x128xf32>, vector<2x128xf32> -> vector<2x128xf32>
    %68 = arith.addf %66, %67 : vector<2x128xf32>
    %69 = arith.negf %68 : vector<2x128xf32>
    %70 = math.exp %69 : vector<2x128xf32>
    %cst_20 = arith.constant 1.000000e+00 : f32
    %71 = vector.broadcast %cst_20 : f32 to vector<2x128xf32>
    %72 = arith.addf %71, %70 : vector<2x128xf32>
    %73 = arith.divf %71, %72 : vector<2x128xf32>
    %74 = math.tanh %68 : vector<2x128xf32>
    %75 = vector.extract_strided_slice %73 {offsets = [0, 0], sizes = [2, 32], strides = [1, 1]} : vector<2x128xf32> to vector<2x32xf32>
    %76 = vector.extract_strided_slice %73 {offsets = [0, 32], sizes = [2, 32], strides = [1, 1]} : vector<2x128xf32> to vector<2x32xf32>
    %77 = vector.extract_strided_slice %74 {offsets = [0, 64], sizes = [2, 32], strides = [1, 1]} : vector<2x128xf32> to vector<2x32xf32>
    %78 = vector.extract_strided_slice %73 {offsets = [0, 96], sizes = [2, 32], strides = [1, 1]} : vector<2x128xf32> to vector<2x32xf32>
    %79 = arith.mulf %76, %62 : vector<2x32xf32>
    %80 = arith.mulf %75, %77 : vector<2x32xf32>
    %81 = arith.addf %79, %80 : vector<2x32xf32>
    %82 = math.tanh %81 : vector<2x32xf32>
    %83 = arith.mulf %78, %82 : vector<2x32xf32>
    %c6 = arith.constant 6 : index
    %c0_21 = arith.constant 0 : index
    %84 = vector.load %arg4[%c6, %c0_21] : memref<16x32xf32, #tpu.memory_space<vmem>>, vector<2x32xf32>
    tpu.vector_store %arg4[%c6, %c0_21], %83 {strides = array<i32>} : memref<16x32xf32, #tpu.memory_space<vmem>>, vector<2x32xf32>,
    %85 = vector.extract_strided_slice %6 {offsets = [8, 0], sizes = [2, 128], strides = [1, 1]} : vector<16x128xf32> to vector<2x128xf32>
    %cst_22 = arith.constant dense<0.000000e+00> : vector<2x128xf32>
    %86 = tpu.matmul %83, %1, %cst_22 {dimension_numbers = #tpu.dot_dimension_numbers<[1], [0], [0], [1], [0, 0, 1, 1], [], []>} : vector<2x32xf32>, vector<32x128xf32>, vector<2x128xf32> -> vector<2x128xf32>
    %87 = arith.addf %85, %86 : vector<2x128xf32>
    %88 = arith.negf %87 : vector<2x128xf32>
    %89 = math.exp %88 : vector<2x128xf32>
    %cst_23 = arith.constant 1.000000e+00 : f32
    %90 = vector.broadcast %cst_23 : f32 to vector<2x128xf32>
    %91 = arith.addf %90, %89 : vector<2x128xf32>
    %92 = arith.divf %90, %91 : vector<2x128xf32>
    %93 = math.tanh %87 : vector<2x128xf32>
    %94 = vector.extract_strided_slice %92 {offsets = [0, 0], sizes = [2, 32], strides = [1, 1]} : vector<2x128xf32> to vector<2x32xf32>
    %95 = vector.extract_strided_slice %92 {offsets = [0, 32], sizes = [2, 32], strides = [1, 1]} : vector<2x128xf32> to vector<2x32xf32>
    %96 = vector.extract_strided_slice %93 {offsets = [0, 64], sizes = [2, 32], strides = [1, 1]} : vector<2x128xf32> to vector<2x32xf32>
    %97 = vector.extract_strided_slice %92 {offsets = [0, 96], sizes = [2, 32], strides = [1, 1]} : vector<2x128xf32> to vector<2x32xf32>
    %98 = arith.mulf %95, %81 : vector<2x32xf32>
    %99 = arith.mulf %94, %96 : vector<2x32xf32>
    %100 = arith.addf %98, %99 : vector<2x32xf32>
    %101 = math.tanh %100 : vector<2x32xf32>
    %102 = arith.mulf %97, %101 : vector<2x32xf32>
    %c8_24 = arith.constant 8 : index
    %c0_25 = arith.constant 0 : index
    %103 = vector.load %arg4[%c8_24, %c0_25] : memref<16x32xf32, #tpu.memory_space<vmem>>, vector<2x32xf32>
    tpu.vector_store %arg4[%c8_24, %c0_25], %102 {strides = array<i32>} : memref<16x32xf32, #tpu.memory_space<vmem>>, vector<2x32xf32>,
    %104 = vector.extract_strided_slice %6 {offsets = [10, 0], sizes = [2, 128], strides = [1, 1]} : vector<16x128xf32> to vector<2x128xf32>
    %cst_26 = arith.constant dense<0.000000e+00> : vector<2x128xf32>
    %105 = tpu.matmul %102, %1, %cst_26 {dimension_numbers = #tpu.dot_dimension_numbers<[1], [0], [0], [1], [0, 0, 1, 1], [], []>} : vector<2x32xf32>, vector<32x128xf32>, vector<2x128xf32> -> vector<2x128xf32>
    %106 = arith.addf %104, %105 : vector<2x128xf32>
    %107 = arith.negf %106 : vector<2x128xf32>
    %108 = math.exp %107 : vector<2x128xf32>
    %cst_27 = arith.constant 1.000000e+00 : f32
    %109 = vector.broadcast %cst_27 : f32 to vector<2x128xf32>
    %110 = arith.addf %109, %108 : vector<2x128xf32>
    %111 = arith.divf %109, %110 : vector<2x128xf32>
    %112 = math.tanh %106 : vector<2x128xf32>
    %113 = vector.extract_strided_slice %111 {offsets = [0, 0], sizes = [2, 32], strides = [1, 1]} : vector<2x128xf32> to vector<2x32xf32>
    %114 = vector.extract_strided_slice %111 {offsets = [0, 32], sizes = [2, 32], strides = [1, 1]} : vector<2x128xf32> to vector<2x32xf32>
    %115 = vector.extract_strided_slice %112 {offsets = [0, 64], sizes = [2, 32], strides = [1, 1]} : vector<2x128xf32> to vector<2x32xf32>
    %116 = vector.extract_strided_slice %111 {offsets = [0, 96], sizes = [2, 32], strides = [1, 1]} : vector<2x128xf32> to vector<2x32xf32>
    %117 = arith.mulf %114, %100 : vector<2x32xf32>
    %118 = arith.mulf %113, %115 : vector<2x32xf32>
    %119 = arith.addf %117, %118 : vector<2x32xf32>
    %120 = math.tanh %119 : vector<2x32xf32>
    %121 = arith.mulf %116, %120 : vector<2x32xf32>
    %c10 = arith.constant 10 : index
    %c0_28 = arith.constant 0 : index
    %122 = vector.load %arg4[%c10, %c0_28] : memref<16x32xf32, #tpu.memory_space<vmem>>, vector<2x32xf32>
    tpu.vector_store %arg4[%c10, %c0_28], %121 {strides = array<i32>} : memref<16x32xf32, #tpu.memory_space<vmem>>, vector<2x32xf32>,
    %123 = vector.extract_strided_slice %6 {offsets = [12, 0], sizes = [2, 128], strides = [1, 1]} : vector<16x128xf32> to vector<2x128xf32>
    %cst_29 = arith.constant dense<0.000000e+00> : vector<2x128xf32>
    %124 = tpu.matmul %121, %1, %cst_29 {dimension_numbers = #tpu.dot_dimension_numbers<[1], [0], [0], [1], [0, 0, 1, 1], [], []>} : vector<2x32xf32>, vector<32x128xf32>, vector<2x128xf32> -> vector<2x128xf32>
    %125 = arith.addf %123, %124 : vector<2x128xf32>
    %126 = arith.negf %125 : vector<2x128xf32>
    %127 = math.exp %126 : vector<2x128xf32>
    %cst_30 = arith.constant 1.000000e+00 : f32
    %128 = vector.broadcast %cst_30 : f32 to vector<2x128xf32>
    %129 = arith.addf %128, %127 : vector<2x128xf32>
    %130 = arith.divf %128, %129 : vector<2x128xf32>
    %131 = math.tanh %125 : vector<2x128xf32>
    %132 = vector.extract_strided_slice %130 {offsets = [0, 0], sizes = [2, 32], strides = [1, 1]} : vector<2x128xf32> to vector<2x32xf32>
    %133 = vector.extract_strided_slice %130 {offsets = [0, 32], sizes = [2, 32], strides = [1, 1]} : vector<2x128xf32> to vector<2x32xf32>
    %134 = vector.extract_strided_slice %131 {offsets = [0, 64], sizes = [2, 32], strides = [1, 1]} : vector<2x128xf32> to vector<2x32xf32>
    %135 = vector.extract_strided_slice %130 {offsets = [0, 96], sizes = [2, 32], strides = [1, 1]} : vector<2x128xf32> to vector<2x32xf32>
    %136 = arith.mulf %133, %119 : vector<2x32xf32>
    %137 = arith.mulf %132, %134 : vector<2x32xf32>
    %138 = arith.addf %136, %137 : vector<2x32xf32>
    %139 = math.tanh %138 : vector<2x32xf32>
    %140 = arith.mulf %135, %139 : vector<2x32xf32>
    %c12 = arith.constant 12 : index
    %c0_31 = arith.constant 0 : index
    %141 = vector.load %arg4[%c12, %c0_31] : memref<16x32xf32, #tpu.memory_space<vmem>>, vector<2x32xf32>
    tpu.vector_store %arg4[%c12, %c0_31], %140 {strides = array<i32>} : memref<16x32xf32, #tpu.memory_space<vmem>>, vector<2x32xf32>,
    %142 = vector.extract_strided_slice %6 {offsets = [14, 0], sizes = [2, 128], strides = [1, 1]} : vector<16x128xf32> to vector<2x128xf32>
    %cst_32 = arith.constant dense<0.000000e+00> : vector<2x128xf32>
    %143 = tpu.matmul %140, %1, %cst_32 {dimension_numbers = #tpu.dot_dimension_numbers<[1], [0], [0], [1], [0, 0, 1, 1], [], []>} : vector<2x32xf32>, vector<32x128xf32>, vector<2x128xf32> -> vector<2x128xf32>
    %144 = arith.addf %142, %143 : vector<2x128xf32>
    %145 = arith.negf %144 : vector<2x128xf32>
    %146 = math.exp %145 : vector<2x128xf32>
    %cst_33 = arith.constant 1.000000e+00 : f32
    %147 = vector.broadcast %cst_33 : f32 to vector<2x128xf32>
    %148 = arith.addf %147, %146 : vector<2x128xf32>
    %149 = arith.divf %147, %148 : vector<2x128xf32>
    %150 = math.tanh %144 : vector<2x128xf32>
    %151 = vector.extract_strided_slice %149 {offsets = [0, 0], sizes = [2, 32], strides = [1, 1]} : vector<2x128xf32> to vector<2x32xf32>
    %152 = vector.extract_strided_slice %149 {offsets = [0, 32], sizes = [2, 32], strides = [1, 1]} : vector<2x128xf32> to vector<2x32xf32>
    %153 = vector.extract_strided_slice %150 {offsets = [0, 64], sizes = [2, 32], strides = [1, 1]} : vector<2x128xf32> to vector<2x32xf32>
    %154 = vector.extract_strided_slice %149 {offsets = [0, 96], sizes = [2, 32], strides = [1, 1]} : vector<2x128xf32> to vector<2x32xf32>
    %155 = arith.mulf %152, %138 : vector<2x32xf32>
    %156 = arith.mulf %151, %153 : vector<2x32xf32>
    %157 = arith.addf %155, %156 : vector<2x32xf32>
    %158 = math.tanh %157 : vector<2x32xf32>
    %159 = arith.mulf %154, %158 : vector<2x32xf32>
    %c14 = arith.constant 14 : index
    %c0_34 = arith.constant 0 : index
    %160 = vector.load %arg4[%c14, %c0_34] : memref<16x32xf32, #tpu.memory_space<vmem>>, vector<2x32xf32>
    tpu.vector_store %arg4[%c14, %c0_34], %159 {strides = array<i32>} : memref<16x32xf32, #tpu.memory_space<vmem>>, vector<2x32xf32>,
    %c0_35 = arith.constant 0 : index
    %c0_36 = arith.constant 0 : index
    %161 = vector.load %arg4[%c0_35, %c0_36] : memref<16x32xf32, #tpu.memory_space<vmem>>, vector<16x32xf32>
    %cst_37 = arith.constant 0.000000e+00 : f32
    %162 = vector.broadcast %cst_37 : f32 to vector<16x32xf32>
    %163 = arith.maximumf %161, %162 : vector<16x32xf32>
    %c16 = arith.constant 16 : index
    %c0_38 = arith.constant 0 : index
    %164 = vector.load %arg2[%c16, %c0_38] : memref<264x32xf32, #tpu.memory_space<vmem>>, vector<32x16xf32>
    %cst_39 = arith.constant dense<0.000000e+00> : vector<16x16xf32>
    %165 = tpu.matmul %163, %164, %cst_39 {dimension_numbers = #tpu.dot_dimension_numbers<[1], [0], [0], [1], [0, 0, 1, 1], [], []>} : vector<16x32xf32>, vector<32x16xf32>, vector<16x16xf32> -> vector<16x16xf32>
    %c48 = arith.constant 48 : index
    %c0_40 = arith.constant 0 : index
    %166 = vector.load %arg2[%c48, %c0_40] : memref<264x32xf32, #tpu.memory_space<vmem>>, vector<1x16xf32>
    %167 = vector.broadcast %166 : vector<1x16xf32> to vector<16x16xf32>
    %168 = arith.addf %165, %167 : vector<16x16xf32>
    %cst_41 = arith.constant 0.000000e+00 : f32
    %169 = vector.broadcast %cst_41 : f32 to vector<16x16xf32>
    %170 = arith.maximumf %168, %169 : vector<16x16xf32>
    %c56 = arith.constant 56 : index
    %c0_42 = arith.constant 0 : index
    %171 = vector.load %arg2[%c56, %c0_42] : memref<264x32xf32, #tpu.memory_space<vmem>>, vector<24x16xf32>
    %cst_43 = arith.constant dense<0.000000e+00> : vector<24x16xf32>
    %172 = tpu.matmul %171, %170, %cst_43 {dimension_numbers = #tpu.dot_dimension_numbers<[1], [0], [0], [1], [0, 0, 1, 1], [], []>} : vector<24x16xf32>, vector<16x16xf32>, vector<24x16xf32> -> vector<24x16xf32>
    %c88 = arith.constant 88 : index
    %c0_44 = arith.constant 0 : index
    %173 = vector.load %arg2[%c88, %c0_44] : memref<264x32xf32, #tpu.memory_space<vmem>>, vector<48x16xf32>
    %cst_45 = arith.constant 0.000000e+00 : f32
    %174 = vector.broadcast %cst_45 : f32 to vector<8x16xf32>
    %175 = vector.extract_strided_slice %172 {offsets = [0, 0], sizes = [8, 16], strides = [1, 1]} : vector<24x16xf32> to vector<8x16xf32>
    %176 = vector.extract_strided_slice %173 {offsets = [0, 0], sizes = [16, 16], strides = [1, 1]} : vector<48x16xf32> to vector<16x16xf32>
    %cst_46 = arith.constant dense<0.000000e+00> : vector<8x16xf32>
    %177 = tpu.matmul %175, %176, %cst_46 {dimension_numbers = #tpu.dot_dimension_numbers<[1], [0], [0], [1], [0, 0, 1, 1], [], []>} : vector<8x16xf32>, vector<16x16xf32>, vector<8x16xf32> -> vector<8x16xf32>
    %178 = arith.addf %174, %177 : vector<8x16xf32>
    %179 = vector.extract_strided_slice %172 {offsets = [8, 0], sizes = [8, 16], strides = [1, 1]} : vector<24x16xf32> to vector<8x16xf32>
    %180 = vector.extract_strided_slice %173 {offsets = [16, 0], sizes = [16, 16], strides = [1, 1]} : vector<48x16xf32> to vector<16x16xf32>
    %cst_47 = arith.constant dense<0.000000e+00> : vector<8x16xf32>
    %181 = tpu.matmul %179, %180, %cst_47 {dimension_numbers = #tpu.dot_dimension_numbers<[1], [0], [0], [1], [0, 0, 1, 1], [], []>} : vector<8x16xf32>, vector<16x16xf32>, vector<8x16xf32> -> vector<8x16xf32>
    %182 = arith.addf %178, %181 : vector<8x16xf32>
    %183 = vector.extract_strided_slice %172 {offsets = [16, 0], sizes = [8, 16], strides = [1, 1]} : vector<24x16xf32> to vector<8x16xf32>
    %184 = vector.extract_strided_slice %173 {offsets = [32, 0], sizes = [16, 16], strides = [1, 1]} : vector<48x16xf32> to vector<16x16xf32>
    %cst_48 = arith.constant dense<0.000000e+00> : vector<8x16xf32>
    %185 = tpu.matmul %183, %184, %cst_48 {dimension_numbers = #tpu.dot_dimension_numbers<[1], [0], [0], [1], [0, 0, 1, 1], [], []>} : vector<8x16xf32>, vector<16x16xf32>, vector<8x16xf32> -> vector<8x16xf32>
    %186 = arith.addf %182, %185 : vector<8x16xf32>
    %c80 = arith.constant 80 : index
    %c0_49 = arith.constant 0 : index
    %187 = vector.load %arg2[%c80, %c0_49] : memref<264x32xf32, #tpu.memory_space<vmem>>, vector<8x1xf32>
    %188 = vector.broadcast %187 : vector<8x1xf32> to vector<8x16xf32>
    %189 = arith.addf %186, %188 : vector<8x16xf32>
    %c136 = arith.constant 136 : index
    %c0_50 = arith.constant 0 : index
    %190 = vector.load %arg2[%c136, %c0_50] : memref<264x32xf32, #tpu.memory_space<vmem>>, vector<6x8xf32>
    %cst_51 = arith.constant dense<0.000000e+00> : vector<6x16xf32>
    %191 = tpu.matmul %190, %189, %cst_51 {dimension_numbers = #tpu.dot_dimension_numbers<[1], [0], [0], [1], [0, 0, 1, 1], [], []>} : vector<6x8xf32>, vector<8x16xf32>, vector<6x16xf32> -> vector<6x16xf32>
    %c152 = arith.constant 152 : index
    %c0_52 = arith.constant 0 : index
    %192 = vector.load %arg2[%c152, %c0_52] : memref<264x32xf32, #tpu.memory_space<vmem>>, vector<48x16xf32>
    %cst_53 = arith.constant 0.000000e+00 : f32
    %193 = vector.broadcast %cst_53 : f32 to vector<2x16xf32>
    %194 = vector.extract_strided_slice %191 {offsets = [0, 0], sizes = [2, 16], strides = [1, 1]} : vector<6x16xf32> to vector<2x16xf32>
    %195 = vector.extract_strided_slice %192 {offsets = [0, 0], sizes = [16, 16], strides = [1, 1]} : vector<48x16xf32> to vector<16x16xf32>
    %cst_54 = arith.constant dense<0.000000e+00> : vector<2x16xf32>
    %196 = tpu.matmul %194, %195, %cst_54 {dimension_numbers = #tpu.dot_dimension_numbers<[1], [0], [0], [1], [0, 0, 1, 1], [], []>} : vector<2x16xf32>, vector<16x16xf32>, vector<2x16xf32> -> vector<2x16xf32>
    %197 = arith.addf %193, %196 : vector<2x16xf32>
    %198 = vector.extract_strided_slice %191 {offsets = [2, 0], sizes = [2, 16], strides = [1, 1]} : vector<6x16xf32> to vector<2x16xf32>
    %199 = vector.extract_strided_slice %192 {offsets = [16, 0], sizes = [16, 16], strides = [1, 1]} : vector<48x16xf32> to vector<16x16xf32>
    %cst_55 = arith.constant dense<0.000000e+00> : vector<2x16xf32>
    %200 = tpu.matmul %198, %199, %cst_55 {dimension_numbers = #tpu.dot_dimension_numbers<[1], [0], [0], [1], [0, 0, 1, 1], [], []>} : vector<2x16xf32>, vector<16x16xf32>, vector<2x16xf32> -> vector<2x16xf32>
    %201 = arith.addf %197, %200 : vector<2x16xf32>
    %202 = vector.extract_strided_slice %191 {offsets = [4, 0], sizes = [2, 16], strides = [1, 1]} : vector<6x16xf32> to vector<2x16xf32>
    %203 = vector.extract_strided_slice %192 {offsets = [32, 0], sizes = [16, 16], strides = [1, 1]} : vector<48x16xf32> to vector<16x16xf32>
    %cst_56 = arith.constant dense<0.000000e+00> : vector<2x16xf32>
    %204 = tpu.matmul %202, %203, %cst_56 {dimension_numbers = #tpu.dot_dimension_numbers<[1], [0], [0], [1], [0, 0, 1, 1], [], []>} : vector<2x16xf32>, vector<16x16xf32>, vector<2x16xf32> -> vector<2x16xf32>
    %205 = arith.addf %201, %204 : vector<2x16xf32>
    %c144 = arith.constant 144 : index
    %c0_57 = arith.constant 0 : index
    %206 = vector.load %arg2[%c144, %c0_57] : memref<264x32xf32, #tpu.memory_space<vmem>>, vector<2x1xf32>
    %207 = vector.broadcast %206 : vector<2x1xf32> to vector<2x16xf32>
    %208 = arith.addf %205, %207 : vector<2x16xf32>
    %c200 = arith.constant 200 : index
    %c0_58 = arith.constant 0 : index
    %209 = vector.load %arg2[%c200, %c0_58] : memref<264x32xf32, #tpu.memory_space<vmem>>, vector<16x16xf32>
    %cst_59 = arith.constant dense<0.000000e+00> : vector<2x16xf32>
    %210 = tpu.matmul %208, %209, %cst_59 {dimension_numbers = #tpu.dot_dimension_numbers<[1], [0], [0], [1], [0, 0, 1, 1], [], []>} : vector<2x16xf32>, vector<16x16xf32>, vector<2x16xf32> -> vector<2x16xf32>
    %c216 = arith.constant 216 : index
    %c0_60 = arith.constant 0 : index
    %211 = vector.load %arg2[%c216, %c0_60] : memref<264x32xf32, #tpu.memory_space<vmem>>, vector<1x16xf32>
    %212 = vector.broadcast %211 : vector<1x16xf32> to vector<2x16xf32>
    %213 = arith.addf %210, %212 : vector<2x16xf32>
    %cst_61 = arith.constant 0.000000e+00 : f32
    %214 = vector.broadcast %cst_61 : f32 to vector<2x16xf32>
    %215 = arith.maximumf %213, %214 : vector<2x16xf32>
    %c224 = arith.constant 224 : index
    %c0_62 = arith.constant 0 : index
    %216 = vector.load %arg2[%c224, %c0_62] : memref<264x32xf32, #tpu.memory_space<vmem>>, vector<16x8xf32>
    %cst_63 = arith.constant dense<0.000000e+00> : vector<2x8xf32>
    %217 = tpu.matmul %215, %216, %cst_63 {dimension_numbers = #tpu.dot_dimension_numbers<[1], [0], [0], [1], [0, 0, 1, 1], [], []>} : vector<2x16xf32>, vector<16x8xf32>, vector<2x8xf32> -> vector<2x8xf32>
    %c240 = arith.constant 240 : index
    %c0_64 = arith.constant 0 : index
    %218 = vector.load %arg2[%c240, %c0_64] : memref<264x32xf32, #tpu.memory_space<vmem>>, vector<1x8xf32>
    %219 = vector.broadcast %218 : vector<1x8xf32> to vector<2x8xf32>
    %220 = arith.addf %217, %219 : vector<2x8xf32>
    %cst_65 = arith.constant 0.000000e+00 : f32
    %221 = vector.broadcast %cst_65 : f32 to vector<2x8xf32>
    %222 = arith.maximumf %220, %221 : vector<2x8xf32>
    %c248 = arith.constant 248 : index
    %c0_66 = arith.constant 0 : index
    %223 = vector.load %arg2[%c248, %c0_66] : memref<264x32xf32, #tpu.memory_space<vmem>>, vector<8x1xf32>
    %cst_67 = arith.constant dense<0.000000e+00> : vector<2x1xf32>
    %224 = tpu.matmul %222, %223, %cst_67 {dimension_numbers = #tpu.dot_dimension_numbers<[1], [0], [0], [1], [0, 0, 1, 1], [], []>} : vector<2x8xf32>, vector<8x1xf32>, vector<2x1xf32> -> vector<2x1xf32>
    %c256 = arith.constant 256 : index
    %c0_68 = arith.constant 0 : index
    %225 = vector.load %arg2[%c256, %c0_68] : memref<264x32xf32, #tpu.memory_space<vmem>>, vector<1x1xf32>
    %226 = vector.broadcast %225 : vector<1x1xf32> to vector<2x1xf32>
    %227 = arith.addf %224, %226 : vector<2x1xf32>
    %c0_69 = arith.constant 0 : index
    %c0_70 = arith.constant 0 : index
    %228 = vector.load %arg3[%c0_69, %c0_70] : memref<2x1xf32, #tpu.memory_space<vmem>>, vector<2x1xf32>
    tpu.vector_store %arg3[%c0_69, %c0_70], %227 {strides = array<i32>} : memref<2x1xf32, #tpu.memory_space<vmem>>, vector<2x1xf32>,
    return
  }
}

</mosaic_0001>

<bundles_post_ra>
// kernel: parametric_lstm_cnn_forward.1
= control target key start
LH: loop header
LB: loop body
LE: loop exit
PB: predicated region body
PF: predicated region fallthrough
CT: control target
= control target key end

     0   :  { %vm30_vm0 = vcmask 1043456   ;;  %vm23_vm1 = vcmask 31744   ;;  %vm59_vm2 = vcmask 261120   ;;  %s1110_s28 = smov 64   ;;  %s1111_s4 = smov 32   ;;  %vm129_vm7 = vcmask 254976   ;;  %s1352_s1 = inlined_call_operand.vmem [shape: f32[48,128], index: 1, kind: input, shape index: {}]   ;;  %s1353_s0 = inlined_call_operand.vmem [shape: f32[16,4], index: 0, kind: input, shape index: {}]   ;;  %s1354_s2 = inlined_call_operand.vmem [shape: f32[264,32], index: 2, kind: input, shape index: {}]   ;;  %s1355_s3 = inlined_call_operand.vmem [shape: f32[2,1], index: 3, kind: output, shape index: {}]  }
   0x1   :  { %v18_v0 = vld [vmem:[%s1352_s1 + $0x20] sm:$0xff]  ;;  %v17_v1 = vld [vmem:[%s1352_s1 + $0x18] sm:$0xff]  ;;  %v16_v4 = vld [vmem:[%s1352_s1 + $0x10] sm:$0xff] }
   0x2   :  { %v14_v2 = vld [vmem:[%s1352_s1] sm:$0xf]  ;;  %75 = vmatpush.msra.mxu1 %v18_v0  ;;  %145 = vmatpush.msra.mxu2 %v18_v0  ;;  %v15_v5 = vld [vmem:[%s1352_s1 + $0x8] sm:$0xff] }
   0x3   :  { %1002 = vmatpush.msk.msra.mxu0 %vm30_vm0, %v14_v2  ;;  %v20_v3 = vld [vmem:[%s1353_s0] sm:$0xff]  ;;  %220 = vmatpush.msra.mxu3 %v18_v0  ;;  %v1159_v7 = vld [vmem:[%s1352_s1 + $0x28] ss:$0 sm:$0xff] }
   0x4   :  { %1003 = vmatmul.msk.f32.vlgmr.msra.gmra.mxu0 %vm23_vm1, %v20_v3  ;;  %76 = vmatpush.msra.mxu1 %v17_v1  ;;  %v57_v6 = vld [vmem:[%s1354_s2] sm:$0x3]  ;;  %v58_v13 = vld [vmem:[%s1354_s2 + $0x8] sm:$0x3] }
   0x5   :  { %146 = vmatpush.msra.mxu2 %v17_v1  ;;  %512 = vmatpush.msrb.mxu0 %v18_v0 }
   0x6   :  { %77 = vmatpush.msra.mxu1 %v16_v4  ;;  %221 = vmatpush.msra.mxu3 %v17_v1 }
   0x7   :  { %147 = vmatpush.msra.mxu2 %v16_v4  ;;  %513 = vmatpush.msrb.mxu0 %v17_v1 }
   0x8   :  { %78 = vmatpush.msra.mxu1 %v15_v5  ;;  %222 = vmatpush.msra.mxu3 %v16_v4 }
   0x9   :  { %1005 = vmatmul.msk.f32.vlgmr.msra.gmra.mxu1 %vm59_vm2, %v57_v6  ;;  %148 = vmatpush.msra.mxu2 %v15_v5 }
   0xa   :  { %223 = vmatpush.msra.mxu3 %v15_v5  ;;  %295 = vmatpush.msrb.mxu1 %v18_v0 }
   0xb   :  { %370 = vmatpush.msrb.mxu2 %v18_v0  ;;  %514 = vmatpush.msrb.mxu0 %v16_v4 }
   0xc   :  { %438 = vmatpush.msrb.mxu3 %v18_v0  ;;  %296 = vmatpush.msrb.mxu1 %v17_v1 }
   0xd   :  { %371 = vmatpush.msrb.mxu2 %v17_v1  ;;  %515 = vmatpush.msrb.mxu0 %v15_v5 }
   0xe   :  { %439 = vmatpush.msrb.mxu3 %v17_v1  ;;  %297 = vmatpush.msrb.mxu1 %v16_v4 }
   0xf   :  { %372 = vmatpush.msrb.mxu2 %v16_v4 }
  0x10   :  { %440 = vmatpush.msrb.mxu3 %v16_v4  ;;  %298 = vmatpush.msrb.mxu1 %v15_v5 }
  0x11   :  { %373 = vmatpush.msrb.mxu2 %v15_v5 }
  0x12   :  { %441 = vmatpush.msrb.mxu3 %v15_v5  ;;  %586 = vmatpush.msra.mxu1 %v18_v0 }
  0x14   :  { %587 = vmatpush.msra.mxu1 %v17_v1 }
  0x16   :  { %588 = vmatpush.msra.mxu1 %v16_v4 }
  0x18   :  { %589 = vmatpush.msra.mxu1 %v15_v5 }
  0x81   :  { %v51_v8 = vpop.f32.mrf.mxu0 }
  0x82   :  { %v1162_v9 = vadd.f32 %v1159_v7, %v51_v8 }
  0x86   :  { %v80_v10 = vpop.f32.mrf.mxu1 }
  0x87   :  { %v83_v11 = vadd.f32 %v80_v10, %v1162_v9 }
  0x89   :  { %1046 = vtanh.f32 %v83_v11  ;;  %v1006_v14 = vmul.f32 -1.442695, %v83_v11 }
  0x8b   :  { %1048 = vpow2.f32 %v1006_v14 }
  0x8f   :  { %v1047_v12 = vpop.eup %1046 }
  0x90   :  { %110 = vrot.lane.b32.xlu0 %v1047_v12, %s1110_s28 }
  0x91   :  { %v1049_v15 = vpop.eup %1048 }
  0x92   :  { %v87_v16 = vadd.f32 1.0, %v1049_v15 }
  0x94   :  { %1050 = vrcp.f32 %v87_v16  ;;  %v99_v22 = vand.u32 2147483648, %v87_v16  ;;  %vm93_vm4 = vweird.f32 %v87_v16  ;;  %v97_v23 = vand.u32 2147483647, %v87_v16 }
  0x96   :  { %v100_v25 = vor.u32 1.1754944e-38, %v99_v22  ;;  %vm98_vm6 = vcmp.eq.f32.partialorder %v97_v23, 8.507059e+37 }
  0x98   :  { %105 = vrot.lane.b32.xlu0 %v58_v13, %s1111_s4 }
  0x9a   :  { %v1051_v17 = vpop.eup %1050 }
  0x9b   :  { %v89_v18 = vmul.f32 %v1051_v17, %v87_v16  ;;  %vm94_vm3 = vweird.f32 %v1051_v17 }
  0x9c   :  { %vm95_vm5 = vmor %vm93_vm4, %vm94_vm3 }
  0x9d   :  { %v90_v19 = vsub.f32 1.0, %v89_v18 }
  0x9f   :  { %v91_v20 = vmul.f32 %v1051_v17, %v90_v19 }
  0xa1   :  { %v92_v21 = vadd.f32 %v1051_v17, %v91_v20 }
  0xa3   :  { %v96_v24 = vsel %vm95_vm5, %v1051_v17, %v92_v21 }
  0xa4   :  { %v101_v27 = vsel %vm98_vm6, %v100_v25, %v96_v24 }
 0x102   :  { %v111_v26 = vpop.permute.xlu0 %110 }
 0x103   :  { %v113_v28 = vmul.f32 %v111_v26, %v101_v27 }
 0x105   :  { %115 = vrot.lane.b32.xlu1 %v113_v28, %s1111_s4 }
 0x10a   :  { %v106_v29 = vpop.permute.xlu0 %105 }
 0x10b   :  { %v108_v30 = vmul.f32 %v106_v29, %v101_v27 }
 0x177   :  { %v116_v31 = vpop.permute.xlu1 %115 }
 0x178   :  { %v118_v32 = vadd.f32 %v116_v31, %v108_v30 }
 0x17a   :  { %1052 = vtanh.f32 %v118_v32  ;;  %v178_v56 = vrot.slane %v118_v32, 6 }
 0x180   :  { %v1053_v33 = vpop.eup %1052 }
 0x181   :  { %121 = vrot.lane.b32.xlu1 %v1053_v33, %s1110_s28 }
 0x1f3   :  { %v122_v34 = vpop.permute.xlu1 %121 }
 0x1f4   :  { %v124_v35 = vmul.f32 %v122_v34, %v101_v27 }
 0x1f6   :  { %126 = vrot.lane.b32.xlu2 %v124_v35, %s1111_s4 }
 0x250   :  { %v127_v36 = vpop.permute.xlu2 %126 }
 0x251   :  { %130 = vst.msk [vmem:[#allocation2] sm:$0x3] %vm129_vm7, %v127_v36  ;;  %1007 = vmatmul.msk.f32.vlgmr.msra.gmra.mxu2 %vm59_vm2, %v127_v36 }
 0x2d4   :  { %v150_v37 = vpop.f32.mrf.mxu2 }
 0x2d5   :  { %v154_v38 = vrot.slane %v150_v37, 6 }
 0x2d7   :  { %v156_v39 = vadd.f32 %v154_v38, %v1162_v9 }
 0x2d9   :  { %1054 = vtanh.f32 %v156_v39  ;;  %v1008_v41 = vmul.f32 -1.442695, %v156_v39 }
 0x2db   :  { %1056 = vpow2.f32 %v1008_v41 }
 0x2df   :  { %v1055_v40 = vpop.eup %1054 }
 0x2e0   :  { %182 = vrot.lane.b32.xlu2 %v1055_v40, %s1110_s28 }
 0x2e1   :  { %v1057_v42 = vpop.eup %1056 }
 0x2e2   :  { %v160_v43 = vadd.f32 1.0, %v1057_v42 }
 0x2e4   :  { %1058 = vrcp.f32 %v160_v43  ;;  %v172_v49 = vand.u32 2147483648, %v160_v43  ;;  %vm166_vm9 = vweird.f32 %v160_v43  ;;  %v170_v50 = vand.u32 2147483647, %v160_v43 }
 0x2e6   :  { %v173_v52 = vor.u32 1.1754944e-38, %v172_v49  ;;  %vm171_vm11 = vcmp.eq.f32.partialorder %v170_v50, 8.507059e+37 }
 0x2ea   :  { %v1059_v44 = vpop.eup %1058 }
 0x2eb   :  { %v162_v45 = vmul.f32 %v1059_v44, %v160_v43  ;;  %vm167_vm8 = vweird.f32 %v1059_v44 }
 0x2ec   :  { %vm168_vm10 = vmor %vm166_vm9, %vm167_vm8 }
 0x2ed   :  { %v163_v46 = vsub.f32 1.0, %v162_v45 }
 0x2ef   :  { %v164_v47 = vmul.f32 %v1059_v44, %v163_v46 }
 0x2f1   :  { %v165_v48 = vadd.f32 %v1059_v44, %v164_v47 }
 0x2f3   :  { %v169_v51 = vsel %vm168_vm10, %v1059_v44, %v165_v48 }
 0x2f4   :  { %v174_v54 = vsel %vm171_vm11, %v173_v52, %v169_v51 }
 0x2f5   :  { %v180_v57 = vmul.f32 %v178_v56, %v174_v54 }
 0x33a   :  { %v183_v53 = vpop.permute.xlu2 %182 }
 0x33b   :  { %v185_v55 = vmul.f32 %v183_v53, %v174_v54 }
 0x33d   :  { %187 = vrot.lane.b32.xlu0 %v185_v55, %s1111_s4 }
 0x3af   :  { %v188_v58 = vpop.permute.xlu0 %187 }
 0x3b0   :  { %v190_v59 = vadd.f32 %v188_v58, %v180_v57  ;;  %v21_v57 = vld [vmem:[%s1353_s0 + $0x8] sm:$0xff] }
 0x3b1   :  { %1004 = vmatmul.msk.f32.gmra.mxu0 %vm23_vm1, %v21_v57 }
 0x3b2   :  { %1060 = vtanh.f32 %v190_v59  ;;  %v253_v22 = vrot.slane %v190_v59, 6 }
 0x3b8   :  { %v1061_v60 = vpop.eup %1060 }
 0x3b9   :  { %193 = vrot.lane.b32.xlu1 %v1061_v60, %s1110_s28 }
 0x42b   :  { %v194_v61 = vpop.permute.xlu1 %193 }
 0x42c   :  { %v1179_v62 = vmul.f32 %v194_v61, %v174_v54 }
 0x42e   :  { %v203_v63 = vrot.slane %v1179_v62, 2  ;;  %v54_v59 = vpop.f32.mrf.mxu0 }
 0x42f   :  { %v1207_v60 = vadd.f32 %v1159_v7, %v54_v59 }
 0x430   :  { %204 = vrot.lane.b32.xlu2 %v203_v63, %s1111_s4 }
 0x48a   :  { %v205_v0 = vpop.permute.xlu2 %204 }
 0x48b   :  { %1009 = vmatmul.msk.f32.vlgmr.msra.gmra.mxu3 %vm59_vm2, %v205_v0 }
 0x50e   :  { %v225_v1 = vpop.f32.mrf.mxu3 }
 0x50f   :  { %v229_v2 = vrot.slane %v225_v1, 4 }
 0x511   :  { %v231_v3 = vadd.f32 %v229_v2, %v1162_v9 }
 0x513   :  { %1062 = vtanh.f32 %v231_v3  ;;  %v1010_v5 = vmul.f32 -1.442695, %v231_v3 }
 0x515   :  { %1064 = vpow2.f32 %v1010_v5 }
 0x519   :  { %v1063_v4 = vpop.eup %1062 }
 0x51a   :  { %257 = vrot.lane.b32.xlu0 %v1063_v4, %s1110_s28 }
 0x51b   :  { %v1065_v6 = vpop.eup %1064 }
 0x51c   :  { %v235_v8 = vadd.f32 1.0, %v1065_v6 }
 0x51e   :  { %1066 = vrcp.f32 %v235_v8  ;;  %v247_v15 = vand.u32 2147483648, %v235_v8  ;;  %vm241_vm13 = vweird.f32 %v235_v8  ;;  %v245_v16 = vand.u32 2147483647, %v235_v8 }
 0x520   :  { %v248_v18 = vor.u32 1.1754944e-38, %v247_v15  ;;  %vm246_vm15 = vcmp.eq.f32.partialorder %v245_v16, 8.507059e+37 }
 0x524   :  { %v1067_v10 = vpop.eup %1066 }
 0x525   :  { %v237_v11 = vmul.f32 %v1067_v10, %v235_v8  ;;  %vm242_vm12 = vweird.f32 %v1067_v10 }
 0x526   :  { %vm243_vm14 = vmor %vm241_vm13, %vm242_vm12 }
 0x527   :  { %v238_v12 = vsub.f32 1.0, %v237_v11 }
 0x529   :  { %v239_v13 = vmul.f32 %v1067_v10, %v238_v12 }
 0x52b   :  { %v240_v14 = vadd.f32 %v1067_v10, %v239_v13 }
 0x52d   :  { %v244_v17 = vsel %vm243_vm14, %v1067_v10, %v240_v14 }
 0x52e   :  { %v249_v20 = vsel %vm246_vm15, %v248_v18, %v244_v17 }
 0x52f   :  { %v255_v23 = vmul.f32 %v253_v22, %v249_v20 }
 0x58c   :  { %v258_v19 = vpop.permute.xlu0 %257 }
 0x58d   :  { %v260_v21 = vmul.f32 %v258_v19, %v249_v20 }
 0x58f   :  { %262 = vrot.lane.b32.xlu1 %v260_v21, %s1111_s4 }
 0x601   :  { %v263_v24 = vpop.permute.xlu1 %262 }
 0x602   :  { %v265_v25 = vadd.f32 %v263_v24, %v255_v23 }
 0x604   :  { %1068 = vtanh.f32 %v265_v25  ;;  %v328_v49 = vrot.slane %v265_v25, 6 }
 0x60a   :  { %v1069_v26 = vpop.eup %1068 }
 0x60b   :  { %268 = vrot.lane.b32.xlu2 %v1069_v26, %s1110_s28 }
 0x665   :  { %v269_v27 = vpop.permute.xlu2 %268 }
 0x666   :  { %v1188_v28 = vmul.f32 %v269_v27, %v249_v20 }
 0x668   :  { %v278_v29 = vrot.slane %v1188_v28, 4 }
 0x66a   :  { %279 = vrot.lane.b32.xlu0 %v278_v29, %s1111_s4 }
 0x6dc   :  { %v280_v30 = vpop.permute.xlu0 %279 }
 0x6dd   :  { %1011 = vmatmul.msk.f32.vlgmr.msrb.gmra.mxu1 %vm59_vm2, %v280_v30 }
 0x75a   :  { %v300_v31 = vpop.f32.mrf.mxu1 }
 0x75b   :  { %v304_v32 = vrot.slane %v300_v31, 2 }
 0x75d   :  { %v306_v33 = vadd.f32 %v304_v32, %v1162_v9 }
 0x75f   :  { %1070 = vtanh.f32 %v306_v33  ;;  %v1012_v35 = vmul.f32 -1.442695, %v306_v33 }
 0x761   :  { %1072 = vpow2.f32 %v1012_v35 }
 0x765   :  { %v1071_v34 = vpop.eup %1070 }
 0x766   :  { %332 = vrot.lane.b32.xlu1 %v1071_v34, %s1110_s28 }
 0x767   :  { %v1073_v36 = vpop.eup %1072 }
 0x768   :  { %v310_v37 = vadd.f32 1.0, %v1073_v36 }
 0x76a   :  { %1074 = vrcp.f32 %v310_v37  ;;  %v322_v43 = vand.u32 2147483648, %v310_v37  ;;  %vm316_vm3 = vweird.f32 %v310_v37  ;;  %v320_v44 = vand.u32 2147483647, %v310_v37 }
 0x76c   :  { %v323_v45 = vor.u32 1.1754944e-38, %v322_v43  ;;  %vm321_vm5 = vcmp.eq.f32.partialorder %v320_v44, 8.507059e+37 }
 0x770   :  { %v1075_v38 = vpop.eup %1074 }
 0x771   :  { %v312_v39 = vmul.f32 %v1075_v38, %v310_v37  ;;  %vm317_vm0 = vweird.f32 %v1075_v38 }
 0x772   :  { %vm318_vm4 = vmor %vm316_vm3, %vm317_vm0 }
 0x773   :  { %v313_v40 = vsub.f32 1.0, %v312_v39 }
 0x775   :  { %v314_v41 = vmul.f32 %v1075_v38, %v313_v40 }
 0x777   :  { %v315_v42 = vadd.f32 %v1075_v38, %v314_v41 }
 0x779   :  { %v319_v9 = vsel %vm318_vm4, %v1075_v38, %v315_v42 }
 0x77a   :  { %v324_v47 = vsel %vm321_vm5, %v323_v45, %v319_v9 }
 0x77b   :  { %v330_v50 = vmul.f32 %v328_v49, %v324_v47 }
 0x7d8   :  { %v333_v46 = vpop.permute.xlu1 %332 }
 0x7d9   :  { %v335_v48 = vmul.f32 %v333_v46, %v324_v47 }
 0x7db   :  { %337 = vrot.lane.b32.xlu2 %v335_v48, %s1111_s4 }
 0x835   :  { %v338_v51 = vpop.permute.xlu2 %337 }
 0x836   :  { %v340_v52 = vadd.f32 %v338_v51, %v330_v50 }
 0x838   :  { %1076 = vtanh.f32 %v340_v52  ;;  %v400_v17 = vrot.slane %v340_v52, 6 }
 0x83e   :  { %v1077_v53 = vpop.eup %1076 }
 0x83f   :  { %343 = vrot.lane.b32.xlu0 %v1077_v53, %s1110_s28 }
 0x8b1   :  { %v344_v54 = vpop.permute.xlu0 %343 }
 0x8b2   :  { %v1197_v55 = vmul.f32 %v344_v54, %v324_v47 }
 0x8b4   :  { %v353_v56 = vrot.slane %v1197_v55, 6 }
 0x8b6   :  { %354 = vrot.lane.b32.xlu1 %v353_v56, %s1111_s4 }
 0x928   :  { %v355_v58 = vpop.permute.xlu1 %354 }
 0x929   :  { %1013 = vmatmul.msk.f32.vlgmr.msrb.gmra.mxu2 %vm59_vm2, %v355_v58 }
 0x9ac   :  { %v375_v61 = vpop.f32.mrf.mxu2 }
 0x9ad   :  { %v378_v63 = vadd.f32 %v375_v61, %v1207_v60 }
 0x9af   :  { %1078 = vtanh.f32 %v378_v63  ;;  %v1014_v1 = vmul.f32 -1.442695, %v378_v63 }
 0x9b1   :  { %1080 = vpow2.f32 %v1014_v1 }
 0x9b5   :  { %v1079_v0 = vpop.eup %1078 }
 0x9b6   :  { %404 = vrot.lane.b32.xlu2 %v1079_v0, %s1110_s28 }
 0x9b7   :  { %v1081_v2 = vpop.eup %1080 }
 0x9b8   :  { %v382_v3 = vadd.f32 1.0, %v1081_v2 }
 0x9ba   :  { %1082 = vrcp.f32 %v382_v3  ;;  %v394_v7 = vand.u32 2147483648, %v382_v3  ;;  %vm388_vm6 = vweird.f32 %v382_v3  ;;  %v392_v11 = vand.u32 2147483647, %v382_v3 }
 0x9bc   :  { %v395_v13 = vor.u32 1.1754944e-38, %v394_v7  ;;  %vm393_vm9 = vcmp.eq.f32.partialorder %v392_v11, 8.507059e+37 }
 0x9c0   :  { %v1083_v4 = vpop.eup %1082 }
 0x9c1   :  { %v384_v5 = vmul.f32 %v1083_v4, %v382_v3  ;;  %vm389_vm1 = vweird.f32 %v1083_v4 }
 0x9c2   :  { %vm390_vm8 = vmor %vm388_vm6, %vm389_vm1  ;;  %vm201_vm6 = vcmask 257026  }
 0x9c3   :  { %v385_v6 = vsub.f32 1.0, %v384_v5 }
 0x9c5   :  { %v386_v8 = vmul.f32 %v1083_v4, %v385_v6 }
 0x9c7   :  { %v387_v10 = vadd.f32 %v1083_v4, %v386_v8 }
 0x9c9   :  { %v391_v12 = vsel %vm390_vm8, %v1083_v4, %v387_v10  ;;  %vm276_vm8 = vcmask 259076  }
 0x9ca   :  { %v396_v15 = vsel %vm393_vm9, %v395_v13, %v391_v12  ;;  %vm351_vm9 = vcmask 261126  }
 0x9cb   :  { %v402_v18 = vmul.f32 %v400_v17, %v396_v15 }
 0xa10   :  { %v405_v14 = vpop.permute.xlu2 %404 }
 0xa11   :  { %v407_v16 = vmul.f32 %v405_v14, %v396_v15 }
 0xa13   :  { %409 = vrot.lane.b32.xlu0 %v407_v16, %s1111_s4 }
 0xa85   :  { %v410_v19 = vpop.permute.xlu0 %409 }
 0xa86   :  { %v412_v20 = vadd.f32 %v410_v19, %v402_v18 }
 0xa88   :  { %1084 = vtanh.f32 %v412_v20  ;;  %v471_v9 = vrot.slane %v412_v20, 6 }
 0xa8e   :  { %v1085_v21 = vpop.eup %1084 }
 0xa8f   :  { %415 = vrot.lane.b32.xlu1 %v1085_v21, %s1110_s28 }
 0xb01   :  { %v416_v22 = vpop.permute.xlu1 %415 }
 0xb02   :  { %v418_v23 = vmul.f32 %v416_v22, %v396_v15 }
 0xb04   :  { %420 = vrot.lane.b32.xlu2 %v418_v23, %s1111_s4 }
 0xb5e   :  { %v421_v24 = vpop.permute.xlu2 %420 }
 0xb5f   :  { %423 = vst.msk [vmem:[#allocation2 + $0x8] sm:$0x3] %vm129_vm7, %v421_v24  ;;  %1015 = vmatmul.msk.f32.vlgmr.msrb.gmra.mxu3 %vm59_vm2, %v421_v24 }
 0xbe2   :  { %v443_v25 = vpop.f32.mrf.mxu3 }
 0xbe3   :  { %v447_v26 = vrot.slane %v443_v25, 6 }
 0xbe5   :  { %v449_v27 = vadd.f32 %v447_v26, %v1207_v60 }
 0xbe7   :  { %1086 = vtanh.f32 %v449_v27  ;;  %v1016_v30 = vmul.f32 -1.442695, %v449_v27 }
 0xbe9   :  { %1088 = vpow2.f32 %v1016_v30 }
 0xbed   :  { %v1087_v29 = vpop.eup %1086 }
 0xbee   :  { %475 = vrot.lane.b32.xlu0 %v1087_v29, %s1110_s28 }
 0xbef   :  { %v1089_v31 = vpop.eup %1088 }
 0xbf0   :  { %v453_v32 = vadd.f32 1.0, %v1089_v31 }
 0xbf2   :  { %1090 = vrcp.f32 %v453_v32  ;;  %v465_v38 = vand.u32 2147483648, %v453_v32  ;;  %vm459_vm10 = vweird.f32 %v453_v32  ;;  %v463_v39 = vand.u32 2147483647, %v453_v32 }
 0xbf4   :  { %v466_v41 = vor.u32 1.1754944e-38, %v465_v38  ;;  %vm464_vm12 = vcmp.eq.f32.partialorder %v463_v39, 8.507059e+37 }
 0xbf8   :  { %v1091_v33 = vpop.eup %1090 }
 0xbf9   :  { %v455_v34 = vmul.f32 %v1091_v33, %v453_v32  ;;  %vm460_vm7 = vweird.f32 %v1091_v33 }
 0xbfa   :  { %vm461_vm11 = vmor %vm459_vm10, %vm460_vm7  ;;  %vm807_vm7 = vcmask 64512   ;;  %vm996_vm10 = vcmask 1024  }
 0xbfb   :  { %v456_v35 = vsub.f32 1.0, %v455_v34 }
 0xbfd   :  { %v457_v36 = vmul.f32 %v1091_v33, %v456_v35 }
 0xbff   :  { %v458_v37 = vadd.f32 %v1091_v33, %v457_v36 }
 0xc01   :  { %v462_v40 = vsel %vm461_vm11, %v1091_v33, %v458_v37 }
 0xc02   :  { %v467_v43 = vsel %vm464_vm12, %v466_v41, %v462_v40 }
 0xc03   :  { %v473_v45 = vmul.f32 %v471_v9, %v467_v43 }
 0xc60   :  { %v476_v42 = vpop.permute.xlu0 %475 }
 0xc61   :  { %v478_v44 = vmul.f32 %v476_v42, %v467_v43 }
 0xc63   :  { %480 = vrot.lane.b32.xlu1 %v478_v44, %s1111_s4 }
 0xcd5   :  { %v481_v46 = vpop.permute.xlu1 %480 }
 0xcd6   :  { %v483_v47 = vadd.f32 %v481_v46, %v473_v45 }
 0xcd8   :  { %1092 = vtanh.f32 %v483_v47  ;;  %v545_v12 = vrot.slane %v483_v47, 6  ;;  %v649_v47 = vld [vmem:[%s1354_s2 + $0x20] sm:$0xff] }
 0xcde   :  { %v1093_v48 = vpop.eup %1092 }
 0xcdf   :  { %486 = vrot.lane.b32.xlu2 %v1093_v48, %s1110_s28  ;;  %v648_v48 = vld [vmem:[%s1354_s2 + $0x18] sm:$0xff] }
 0xd39   :  { %v487_v49 = vpop.permute.xlu2 %486 }
 0xd3a   :  { %v489_v50 = vmul.f32 %v487_v49, %v467_v43  ;;  %v647_v49 = vld [vmem:[%s1354_s2 + $0x10] sm:$0xff] }
 0xd3c   :  { %v495_v51 = vrot.slane %v489_v50, 2 }
 0xd3e   :  { %496 = vrot.lane.b32.xlu0 %v495_v51, %s1111_s4 }
 0xdb0   :  { %v497_v52 = vpop.permute.xlu0 %496 }
 0xdb1   :  { %1017 = vmatmul.msk.f32.vlgmr.msrb.gmra.mxu0 %vm59_vm2, %v497_v52 }
 0xe2e   :  { %v517_v53 = vpop.f32.mrf.mxu0 }
 0xe2f   :  { %v521_v54 = vrot.slane %v517_v53, 4 }
 0xe31   :  { %v523_v56 = vadd.f32 %v521_v54, %v1207_v60 }
 0xe33   :  { %1094 = vtanh.f32 %v523_v56  ;;  %v1018_v58 = vmul.f32 -1.442695, %v523_v56 }
 0xe35   :  { %1096 = vpow2.f32 %v1018_v58 }
 0xe39   :  { %v1095_v57 = vpop.eup %1094 }
 0xe3a   :  { %549 = vrot.lane.b32.xlu1 %v1095_v57, %s1110_s28 }
 0xe3b   :  { %v1097_v59 = vpop.eup %1096 }
 0xe3c   :  { %v527_v61 = vadd.f32 1.0, %v1097_v59  ;;  %v724_v59 = vld [vmem:[%s1354_s2 + $0x60] sm:$0xff] }
 0xe3d   :  { %769 = vmatpush.msrb.mxu1 %v724_v59 }
 0xe3e   :  { %1098 = vrcp.f32 %v527_v61  ;;  %v539_v4 = vand.u32 2147483648, %v527_v61  ;;  %vm533_vm14 = vweird.f32 %v527_v61  ;;  %v537_v5 = vand.u32 2147483647, %v527_v61 }
 0xe40   :  { %v540_v8 = vor.u32 1.1754944e-38, %v539_v4  ;;  %vm538_vm0 = vcmp.eq.f32.partialorder %v537_v5, 8.507059e+37  ;;  %v684_v4 = vld [vmem:[%s1354_s2 + $0x38] sm:$0xff]  ;;  %v685_v5 = vld [vmem:[%s1354_s2 + $0x40] sm:$0xff] }
 0xe44   :  { %v1099_v63 = vpop.eup %1098 }
 0xe45   :  { %v529_v0 = vmul.f32 %v1099_v63, %v527_v61  ;;  %vm534_vm13 = vweird.f32 %v1099_v63  ;;  %v1042_v61 = vld [vmem:[%s1354_s2 + $0x30] ss:$0 sm:$0xff] }
 0xe46   :  { %vm535_vm15 = vmor %vm533_vm14, %vm534_vm13 }
 0xe47   :  { %v530_v1 = vsub.f32 1.0, %v529_v0 }
 0xe49   :  { %v531_v2 = vmul.f32 %v1099_v63, %v530_v1 }
 0xe4b   :  { %v532_v3 = vadd.f32 %v1099_v63, %v531_v2 }
 0xe4d   :  { %v536_v6 = vsel %vm535_vm15, %v1099_v63, %v532_v3 }
 0xe4e   :  { %v541_v7 = vsel %vm538_vm0, %v540_v8, %v536_v6  ;;  %v686_v6 = vld [vmem:[%s1354_s2 + $0x48] sm:$0xff]  ;;  %v723_v8 = vld [vmem:[%s1354_s2 + $0x58] sm:$0xff] }
 0xe4f   :  { %v547_v13 = vmul.f32 %v545_v12, %v541_v7  ;;  %770 = vmatpush.msrb.mxu1 %v723_v8  ;;  %v727_v12 = vld [vmem:[%s1354_s2 + $0x78] sm:$0xff] }
 0xeac   :  { %v550_v10 = vpop.permute.xlu1 %549 }
 0xead   :  { %v552_v11 = vmul.f32 %v550_v10, %v541_v7  ;;  %v726_v10 = vld [vmem:[%s1354_s2 + $0x70] sm:$0xff] }
 0xeae   :  { %746 = vmatpush.msra.mxu0 %v726_v10 }
 0xeaf   :  { %554 = vrot.lane.b32.xlu2 %v552_v11, %s1111_s4  ;;  %v728_v11 = vld [vmem:[%s1354_s2 + $0x80] sm:$0xff] }
 0xf09   :  { %v555_v14 = vpop.permute.xlu2 %554 }
 0xf0a   :  { %v557_v15 = vadd.f32 %v555_v14, %v547_v13  ;;  %v799_v13 = vld [vmem:[%s1354_s2 + $0x50] sm:$0xff]  ;;  %v1112_v14 = vmov 0  }
 0xf0b   :  { %1039 = vset.pattern.permute.xlu2 %v1112_v14  ;;  %1040 = vset.pattern.permute.xlu0 %v1112_v14 }
 0xf0c   :  { %1100 = vtanh.f32 %v557_v15  ;;  %v619_v41 = vrot.slane %v557_v15, 6 }
 0xf12   :  { %v1101_v16 = vpop.eup %1100 }
 0xf13   :  { %560 = vrot.lane.b32.xlu0 %v1101_v16, %s1110_s28 }
 0xf85   :  { %v561_v17 = vpop.permute.xlu0 %560 }
 0xf86   :  { %v563_v18 = vmul.f32 %v561_v17, %v541_v7  ;;  %v725_v7 = vld [vmem:[%s1354_s2 + $0x68] sm:$0xff] }
 0xf87   :  { %747 = vmatpush.msra.mxu0 %v725_v7 }
 0xf88   :  { %v569_v19 = vrot.slane %v563_v18, 4 }
 0xf89   :  { %792 = vmatpush.msrb.mxu0 %v728_v11 }
 0xf8a   :  { %570 = vrot.lane.b32.xlu1 %v569_v19, %s1111_s4 }
 0xf8b   :  { %793 = vmatpush.msrb.mxu0 %v727_v12 }
 0xffc   :  { %v571_v20 = vpop.permute.xlu1 %570 }
 0xffd   :  { %1019 = vmatmul.msk.f32.vlgmr.msra.gmra.mxu1 %vm59_vm2, %v571_v20 }
0x107a   :  { %v591_v21 = vpop.f32.mrf.mxu1 }
0x107b   :  { %v595_v22 = vrot.slane %v591_v21, 2 }
0x107d   :  { %v597_v23 = vadd.f32 %v595_v22, %v1207_v60 }
0x107f   :  { %1102 = vtanh.f32 %v597_v23  ;;  %v1020_v25 = vmul.f32 -1.442695, %v597_v23 }
0x1081   :  { %1104 = vpow2.f32 %v1020_v25 }
0x1085   :  { %v1103_v24 = vpop.eup %1102 }
0x1086   :  { %623 = vrot.lane.b32.xlu2 %v1103_v24, %s1110_s28 }
0x1087   :  { %v1105_v26 = vpop.eup %1104 }
0x1088   :  { %v601_v27 = vadd.f32 1.0, %v1105_v26  ;;  %v806_v26 = vld [vmem:[%s1354_s2 + $0x88] sm:$0x3f] }
0x108a   :  { %1106 = vrcp.f32 %v601_v27  ;;  %v613_v60 = vand.u32 2147483648, %v601_v27  ;;  %vm607_vm4 = vweird.f32 %v601_v27  ;;  %v611_v34 = vand.u32 2147483647, %v601_v27 }
0x108c   :  { %v614_v36 = vor.u32 1.1754944e-38, %v613_v60  ;;  %vm612_vm1 = vcmp.eq.f32.partialorder %v611_v34, 8.507059e+37 }
0x108e   :  { %198 = vrot.lane.b32.xlu2 %v1179_v62, %s1111_s4 }
0x1090   :  { %v1107_v29 = vpop.eup %1106 }
0x1091   :  { %v603_v30 = vmul.f32 %v1107_v29, %v601_v27  ;;  %vm608_vm3 = vweird.f32 %v1107_v29  ;;  %v832_v27 = vld [vmem:[%s1354_s2 + $0xa0] sm:$0xff] }
0x1092   :  { %vm609_vm5 = vmor %vm607_vm4, %vm608_vm3 }
0x1093   :  { %v604_v31 = vsub.f32 1.0, %v603_v30  ;;  %v836_v30 = vld [vmem:[%s1354_s2 + $0xc0] sm:$0xff] }
0x1095   :  { %v605_v32 = vmul.f32 %v1107_v29, %v604_v31  ;;  %v833_v31 = vld [vmem:[%s1354_s2 + $0xa8] sm:$0xff] }
0x1096   :  { %491 = vrot.lane.b32.xlu2 %v489_v50, %s1111_s4 }
0x1097   :  { %v606_v33 = vadd.f32 %v1107_v29, %v605_v32  ;;  %v835_v32 = vld [vmem:[%s1354_s2 + $0xb8] sm:$0xff] }
0x1099   :  { %v610_v35 = vsel %vm609_vm5, %v1107_v29, %v606_v33  ;;  %v831_v29 = vld [vmem:[%s1354_s2 + $0x98] sm:$0xff]  ;;  %v907_v33 = vld [vmem:[%s1354_s2 + $0x90] sm:$0x3] }
0x109a   :  { %v615_v37 = vsel %vm612_vm1, %v614_v36, %v610_v35  ;;  %v915_v36 = vld [vmem:[%s1354_s2 + $0xd0] sm:$0xff] }
0x109b   :  { %v621_v42 = vmul.f32 %v619_v41, %v615_v37 }
0x109e   :  { %802 = vperm.xlu2 %1039, %v799_v13  }
0x10e0   :  { %v624_v62 = vpop.permute.xlu2 %623 }
0x10e1   :  { %v626_v38 = vmul.f32 %v624_v62, %v615_v37  ;;  %v914_v62 = vld [vmem:[%s1354_s2 + $0xc8] sm:$0xff] }
0x10e3   :  { %628 = vrot.lane.b32.xlu0 %v626_v38, %s1111_s4 }
0x10e8   :  { %v199_v39 = vpop.permute.xlu2 %198 }
0x10e9   :  { %202 = vst.msk [vmem:[#allocation2] sm:$0xc] %vm201_vm6, %v199_v39 }
0x10eb   :  { %273 = vrot.lane.b32.xlu0 %v1188_v28, %s1111_s4  ;;  %v650_v28 = vld [vmem:[%s1354_s2 + $0x28] sm:$0xff] }
0x10ec   :  { %671 = vmatpush.msra.mxu2 %v650_v28 }
0x10ee   :  { %672 = vmatpush.msra.mxu2 %v649_v47 }
0x10f0   :  { %v492_v40 = vpop.permute.xlu2 %491  ;;  %673 = vmatpush.msra.mxu2 %v648_v48  ;;  %v970_v48 = vld [vmem:[%s1354_s2 + $0xf8] sm:$0xff] }
0x10f1   :  { %494 = vst.msk [vmem:[#allocation2 + $0x8] sm:$0xc] %vm201_vm6, %v492_v40 }
0x10f2   :  { %674 = vmatpush.msra.mxu2 %v647_v49  ;;  %v1044_v49 = vld [vmem:[%s1354_s2 + $0xf0] ss:$0 sm:$0xff] }
0x10f3   :  { %565 = vrot.lane.b32.xlu0 %v563_v18, %s1111_s4  ;;  %v834_v18 = vld [vmem:[%s1354_s2 + $0xb0] sm:$0xff] }
0x10f4   :  { %855 = vmatpush.msrb.mxu2 %v834_v18 }
0x10f6   :  { %856 = vmatpush.msrb.mxu2 %v833_v31 }
0x10f8   :  { %v803_v23 = vpop.permute.xlu2 %802 }
0x10fb   :  { %910 = vperm.xlu0 %1040, %v907_v33  }
0x1155   :  { %v629_v43 = vpop.permute.xlu0 %628 }
0x1156   :  { %v631_v44 = vadd.f32 %v629_v43, %v621_v42 }
0x1158   :  { %1108 = vtanh.f32 %v631_v44 }
0x115d   :  { %v274_v9 = vpop.permute.xlu0 %273 }
0x115e   :  { %v1109_v45 = vpop.eup %1108  ;;  %277 = vst.msk [vmem:[#allocation2] sm:$0x30] %vm276_vm8, %v274_v9  ;;  %v942_v9 = vld [vmem:[%s1354_s2 + $0xe0] sm:$0xff] }
0x115f   :  { %634 = vrot.lane.b32.xlu1 %v1109_v45, %s1110_s28  ;;  %v1043_v45 = vld [vmem:[%s1354_s2 + $0xd8] ss:$0 sm:$0xff] }
0x1165   :  { %v566_v46 = vpop.permute.xlu0 %565 }
0x1166   :  { %568 = vst.msk [vmem:[#allocation2 + $0x8] sm:$0x30] %vm276_vm8, %v566_v46 }
0x1167   :  { %348 = vrot.lane.b32.xlu1 %v1197_v55, %s1111_s4 }
0x116d   :  { %v911_v42 = vpop.permute.xlu0 %910 }
0x11d1   :  { %v635_v55 = vpop.permute.xlu1 %634 }
0x11d2   :  { %v637_v50 = vmul.f32 %v635_v55, %v615_v37  ;;  %v943_v37 = vld [vmem:[%s1354_s2 + $0xe8] sm:$0xff] }
0x11d4   :  { %639 = vrot.lane.b32.xlu1 %v637_v50, %s1111_s4 }
0x11d9   :  { %v349_v51 = vpop.permute.xlu1 %348 }
0x11da   :  { %352 = vst.msk [vmem:[#allocation2] sm:$0xc0] %vm351_vm9, %v349_v51 }
0x11e1   :  { %v643_v52 = vld [vmem:[#allocation2] sm:$0xff] }
0x11e2   :  { %v645_v53 = vmax.f32 %v643_v52, 0.0  ;;  %v1045_v52 = vld [vmem:[%s1354_s2 + $0x100] ss:$0 sm:$0xff] }
0x11e4   :  { %1021 = vmatmul.msk.f32.vlgmr.msra.gmra.mxu2 %vm59_vm2, %v645_v53 }
0x11e5   :  { %935 = vmatpush.msra.mxu2 %v915_v36 }
0x11e7   :  { %936 = vmatpush.msra.mxu2 %v914_v62 }
0x1246   :  { %v640_v54 = vpop.permute.xlu1 %639 }
0x1247   :  { %642 = vst.msk [vmem:[#allocation2 + $0x8] sm:$0xc0] %vm351_vm9, %v640_v54 }
0x124e   :  { %v644_v56 = vld [vmem:[#allocation2 + $0x8] sm:$0xff] }
0x124f   :  { %v646_v57 = vmax.f32 %v644_v56, 0.0 }
0x1251   :  { %1022 = vmatmul.msk.f32.gmra.mxu2 %vm59_vm2, %v646_v57  ;;  %vm687_vm2 = vcmask 130048  }
0x1267   :  { %v676_v58 = vpop.f32.mrf.mxu2 }
0x1268   :  { %v677_v0 = vadd.f32 %v1042_v61, %v676_v58 }
0x126a   :  { %v682_v3 = vmax.f32 %v677_v0, 0.0 }
0x12d4   :  { %v679_v63 = vpop.f32.mrf.mxu2 }
0x12d5   :  { %v680_v1 = vadd.f32 %v1042_v61, %v679_v63 }
0x12d7   :  { %v683_v2 = vmax.f32 %v680_v1, 0.0 }
0x12d9   :  { %711 = vmatpush.msra.mxu3 %v683_v2 }
0x12db   :  { %712 = vmatpush.msra.mxu3 %v682_v3 }
0x12dc   :  { %1023 = vmatmul.msk.f32.vlgmr.msra.gmra.mxu3 %vm687_vm2, %v684_v4 }
0x12dd   :  { %963 = vmatpush.msrb.mxu3 %v943_v37 }
0x12df   :  { %964 = vmatpush.msrb.mxu3 %v942_v9 }
0x12e4   :  { %1024 = vmatmul.msk.f32.gmra.mxu3 %vm687_vm2, %v685_v5 }
0x12ec   :  { %1025 = vmatmul.msk.f32.gmra.mxu3 %vm687_vm2, %v686_v6 }
0x135f   :  { %v714_v15 = vpop.f32.mrf.mxu3 }
0x1360   :  { %1027 = vmatmul.msk.f32.vlgmr.msrb.gmra.mxu1 %vm687_vm2, %v714_v15 }
0x1367   :  { %v717_v16 = vpop.f32.mrf.mxu3 }
0x1368   :  { %1026 = vmatmul.msk.f32.vlgmr.msra.gmra.mxu0 %vm687_vm2, %v717_v16 }
0x1369   :  { %877 = vmatpush.msra.mxu0 %v832_v27 }
0x136b   :  { %878 = vmatpush.msra.mxu0 %v831_v29 }
0x136f   :  { %v720_v17 = vpop.f32.mrf.mxu3 }
0x1370   :  { %1028 = vmatmul.msk.f32.vlgmr.msrb.gmra.mxu0 %vm687_vm2, %v720_v17 }
0x1371   :  { %991 = vmatpush.msrb.mxu0 %v970_v48 }
0x13dd   :  { %v772_v20 = vpop.f32.mrf.mxu1 }
0x13e5   :  { %v749_v19 = vpop.f32.mrf.mxu0 }
0x13e6   :  { %v773_v21 = vadd.f32 %v772_v20, %v749_v19 }
0x13ed   :  { %v795_v22 = vpop.f32.mrf.mxu0 }
0x13ee   :  { %v798_v24 = vadd.f32 %v795_v22, %v773_v21 }
0x13f0   :  { %v805_v25 = vadd.f32 %v803_v23, %v798_v24 }
0x13f2   :  { %826 = vmatpush.msra.mxu1 %v805_v25 }
0x13f3   :  { %1029 = vmatmul.msk.f32.vlgmr.msra.gmra.mxu1 %vm807_vm7, %v806_v26 }
0x13f4   :  { %900 = vmatpush.msrb.mxu1 %v836_v30 }
0x13f6   :  { %901 = vmatpush.msrb.mxu1 %v835_v32 }
0x1470   :  { %v828_v60 = vpop.f32.mrf.mxu1 }
0x1471   :  { %v838_v34 = vrot.slane %v828_v60, 2  ;;  %v883_v35 = vrot.slane %v828_v60, 4  ;;  %1031 = vmatmul.msk.f32.vlgmr.msra.gmra.mxu0 %vm687_vm2, %v828_v60 }
0x1473   :  { %1030 = vmatmul.msk.f32.vlgmr.msrb.gmra.mxu2 %vm687_vm2, %v838_v34  ;;  %1032 = vmatmul.msk.f32.vlgmr.msrb.gmra.mxu1 %vm687_vm2, %v883_v35 }
0x14ee   :  { %v880_v38 = vpop.f32.mrf.mxu0 }
0x14f0   :  { %v903_v41 = vpop.f32.mrf.mxu1 }
0x14f6   :  { %v858_v39 = vpop.f32.mrf.mxu2 }
0x14f7   :  { %v881_v40 = vadd.f32 %v880_v38, %v858_v39 }
0x14f9   :  { %v906_v43 = vadd.f32 %v903_v41, %v881_v40 }
0x14fb   :  { %v913_v44 = vadd.f32 %v911_v42, %v906_v43 }
0x14fd   :  { %1033 = vmatmul.msk.f32.vlgmr.msra.gmra.mxu2 %vm687_vm2, %v913_v44 }
0x1580   :  { %v938_v46 = vpop.f32.mrf.mxu2 }
0x1581   :  { %v939_v28 = vadd.f32 %v1043_v45, %v938_v46 }
0x1583   :  { %v941_v47 = vmax.f32 %v939_v28, 0.0 }
0x1585   :  { %1034 = vmatmul.msk.f32.vlgmr.msrb.gmra.mxu3 %vm687_vm2, %v941_v47 }
0x1608   :  { %v966_v55 = vpop.f32.mrf.mxu3 }
0x1609   :  { %v967_v50 = vadd.f32 %v1044_v49, %v966_v55 }
0x160b   :  { %v969_v51 = vmax.f32 %v967_v50, 0.0 }
0x160d   :  { %1035 = vmatmul.msk.f32.vlgmr.msrb.gmra.mxu0 %vm807_vm7, %v969_v51 }
0x168a   :  { %v993_v53 = vpop.f32.mrf.mxu0 }
0x168b   :  { %v994_v54 = vadd.f32 %v1045_v52, %v993_v53 }
0x168d   :  { %997 = vst.msk [vmem:[%s1355_s3] sm:$0x3] %vm996_vm10, %v994_v54 }

</bundles_post_ra>
